<compile_context>
chip_gen: v6e
topology: v6e:2x2x1
jax: 0.10.0
libtpu: 0.0.40
codegen_flags: <defaults>
</compile_context>

<pallas_src>
import functools
import math

import jax
import jax.numpy as jnp
from jax.experimental import pallas as pl
from jax.experimental.pallas import tpu as pltpu


def make_positional_encoding_table(d_model: int, max_len: int = 5000,
                                   dtype=jnp.float32) -> jnp.ndarray:
    """Deterministic sinusoidal table, identical to the PyTorch __init__."""
    position = jnp.arange(0, max_len, dtype=jnp.float32)[:, None]            # (L, 1)
    div_term = jnp.exp(
        jnp.arange(0, d_model, 2, dtype=jnp.float32) * (-math.log(10000.0) / d_model)
    )                                                                        # (D/2,)
    pe = jnp.zeros((max_len, d_model), dtype=jnp.float32)
    pe = pe.at[:, 0::2].set(jnp.sin(position * div_term))
    pe = pe.at[:, 1::2].set(jnp.cos(position * div_term))
    return pe.astype(dtype)                                                  # (L, D)


# ----------------------------------------------------------------------------- kernel


def _pe_add_kernel(x_ref, pe_ref, o_ref, *, d_model: int, batches_per_block: int):
    # x_ref / o_ref: (tS, tb*D) lane-dense tiles; pe_ref: (tS, D), same dtype as x.
    pe = pe_ref[...]
    if batches_per_block == 1:
        o_ref[...] = x_ref[...] + pe
    elif batches_per_block <= 16 or d_model % 128 != 0:
        # Static unroll: offsets are compile-time constants (lane-aligned when
        # D % 128 == 0); no full-width pe temporary is ever materialized.
        for b in range(batches_per_block):
            sl = slice(b * d_model, (b + 1) * d_model)
            o_ref[:, sl] = x_ref[:, sl] + pe
    else:
        # Many batches per block and D is a multiple of 128: rolled loop with
        # lane-aligned dynamic offsets keeps trace/compile time bounded.
        def body(b, carry):
            off = pl.multiple_of(b * d_model, 128)
            o_ref[:, pl.ds(off, d_model)] = x_ref[:, pl.ds(off, d_model)] + pe
            return carry

        jax.lax.fori_loop(0, batches_per_block, body, 0, unroll=False)


# -------------------------------------------------------------------------- tile sizing

_VMEM_LIMIT_BYTES = 32 * 1024 * 1024       # safe scoped limit on v5e/v6e/v7x
_VMEM_CEILING_BYTES = 48 * 1024 * 1024     # stay well inside v7x's 64 MiB per TC
_BLOCK_BUDGET_BYTES = 16 * 1024 * 1024     # double-buffered blocks + in-kernel temps


def _ceil_div(a: int, b: int) -> int:
    return -(-a // b)


def _round_up(a: int, b: int) -> int:
    return _ceil_div(a, b) * b


def _num_tensorcores() -> int:
    """Best-effort TensorCore count of one device (v7x=2, v5e/v6e=1)."""
    try:
        dev = jax.devices()[0]
        for attr in ("num_cores", "core_count"):
            v = getattr(dev, attr, None)
            if isinstance(v, int) and v > 0:
                return v
        kind = str(getattr(dev, "device_kind", "")).lower()
        if "v7" in kind:
            return 2
    except Exception:
        pass
    return 1


def _choose_tiles(S: int, B: int, D: int, itemsize: int, budget: int,
                  num_cores: int):
    """Pick (seq_tile, batches_per_lane_tile, est_block_bytes)."""
    sub = max(8, 32 // itemsize)           # sublane multiple: 8 f32, 16 bf16, 32 int8

    def per_row_bytes(tb: int) -> int:
        # 2x double-buffered x-in + 2x double-buffered out        -> 4*tb*D
        # 2x double-buffered pe  + ~2 rows of in-kernel temps     -> 4*D
        return (4 * tb + 4) * D * itemsize

    min_rows = min(sub, S)

    # ---- lane (batch) tiling: split only when a minimal-height block of the
    # full batch width would blow the block budget (wide-row failure mode).
    tb = B
    if B > 1 and per_row_bytes(B) * min_rows > budget:
        step = 128 // math.gcd(D, 128)     # smallest tb keeping tb*D % 128 == 0
        if step < B:
            max_tb = (budget // (min_rows * D * itemsize) - 4) // 4
            tb = max(step, (max_tb // step) * step)
            tb = min(tb, B)
        # else: cannot split without breaking the 128-lane block constraint;
        # keep tb = B and (below) raise the vmem limit instead (rare corner).

    # ---- sequence tiling: as large as fits the budget.
    t = max(1, budget // per_row_bytes(tb))
    t = min(t, S)
    if num_cores > 1 and S > sub:
        # Multi-TC parts: keep >= 2 steps along the sequence axis.
        t = min(t, _round_up(_ceil_div(S, 2), sub))
    if t < S:
        t = max(sub, (t // sub) * sub)     # sublane-aligned tile
    if num_cores > 1:
        steps = _ceil_div(S, t)
        if steps > 1 and steps % 2 == 1:   # prefer an even step count (equal halves)
            t2 = max(sub, _round_up(_ceil_div(S, steps + 1), sub))
            t = min(t, t2)

    return t, tb, per_row_bytes(tb) * t


# ------------------------------------------------------------------------------ wrapper


def positional_encoding(x: jnp.ndarray, pe_table: jnp.ndarray, *,
                        block_budget_bytes: int = _BLOCK_BUDGET_BYTES) -> jnp.ndarray:
    """x: [S, B, D]. Returns x + pe_table[:S] broadcast over batch (eval-mode fwd)."""
    S, B, D = x.shape
    max_len, d_model = pe_table.shape
    assert d_model == D, "pe table embed dim must match x"
    assert S <= max_len, "sequence longer than positional table"

    # Tiny / non-lane-dense shapes: output last dim < 128 would force masked
    # partial stores; a standalone Pallas call is strictly worse than XLA here.
    if B * D < 128:
        return x + pe_table[:S].astype(x.dtype)[:, None, :]

    itemsize = x.dtype.itemsize
    num_cores = _num_tensorcores()
    tS, tb, block_bytes = _choose_tiles(S, B, D, itemsize, block_budget_bytes,
                                        num_cores)

    # Lane-dense view: merging trailing dims is a free bitcast for default layouts.
    # TODO(synk): if x arrives with a non-default layout this reshape may insert a
    # relayout copy; switch to a 3-D BlockSpec on x in that case.
    x2d = x.reshape(S, B * D)

    # Index pe rows straight out of the table (no wrapper slice / extra HBM pass);
    # only when tS is not a multiple of 8 (tiny S) take a full-extent slice so the
    # (8, 128) block constraint is satisfied.  Cast once so the kernel never casts.
    pe_in = pe_table if (tS % 8 == 0) else pe_table[:S]
    if pe_in.dtype != x.dtype:
        pe_in = pe_in.astype(x.dtype)

    vmem_limit = _VMEM_LIMIT_BYTES
    if block_bytes > vmem_limit:                       # wide-row corner case
        vmem_limit = min(block_bytes + (2 << 20), _VMEM_CEILING_BYTES)

    grid = (pl.cdiv(S, tS), pl.cdiv(B, tb))

    out2d = pl.pallas_call(
        functools.partial(_pe_add_kernel, d_model=D, batches_per_block=tb),
        out_shape=jax.ShapeDtypeStruct((S, B * D), x.dtype),
        grid=grid,
        in_specs=[
            pl.BlockSpec((tS, tb * D), lambda i, j: (i, j)),
            pl.BlockSpec((tS, D), lambda i, j: (i, 0)),
        ],
        out_specs=pl.BlockSpec((tS, tb * D), lambda i, j: (i, j)),
        input_output_aliases={0: 0},                   # in-place add when x is donated
        compiler_params=pltpu.CompilerParams(
            dimension_semantics=("parallel", "parallel"),
            vmem_limit_bytes=vmem_limit,
        ),
    )(x2d, pe_in)

    return out2d.reshape(S, B, D)


# --------------------------------------------------------------------------------- test

if __name__ == "__main__":
    # 1) Small shape exercising the Pallas path (B*D = 128 -> lane-dense).
    S, B, D = 8, 2, 64
    key = jax.random.PRNGKey(0)
    x = jax.random.normal(key, (S, B, D), dtype=jnp.float32)
    pe_table = make_positional_encoding_table(D, max_len=5000, dtype=jnp.float32)

    # Reference computed before the kernel call (kernel may alias its input).
    ref = x + pe_table[:S][:, None, :]
    out = jax.block_until_ready(jax.jit(positional_encoding)(x, pe_table))
    assert out.shape == (S, B, D)
    assert jnp.allclose(out, ref, atol=1e-6), "mismatch vs reference (f32 path)"

    # 2) bf16 input, tiny block budget -> multi-step 2-D grid (seq + lane split),
    #    exercises sublane rounding, lane-axis tiling and the wrapper pe cast.
    S2, B2, D2 = 32, 4, 128
    x2 = jax.random.normal(jax.random.PRNGKey(1), (S2, B2, D2), dtype=jnp.bfloat16)
    pe2 = make_positional_encoding_table(D2, max_len=64, dtype=jnp.float32)
    ref2 = x2.astype(jnp.float32) + pe2[:S2][:, None, :]
    fn2 = functools.partial(positional_encoding, block_budget_bytes=16 * 1024)
    out2 = jax.block_until_ready(jax.jit(fn2)(x2, pe2))
    assert out2.shape == (S2, B2, D2) and out2.dtype == jnp.bfloat16
    assert jnp.allclose(out2.astype(jnp.float32), ref2, atol=5e-2), \
        "mismatch vs reference (bf16 tiled path)"

    # 3) Tiny-lane fallback path (B*D = 64 < 128 -> plain XLA add).
    S3, B3, D3 = 8, 2, 32
    x3 = jax.random.normal(jax.random.PRNGKey(2), (S3, B3, D3), dtype=jnp.float32)
    pe3 = make_positional_encoding_table(D3, max_len=5000, dtype=jnp.float32)
    ref3 = x3 + pe3[:S3][:, None, :]
    out3 = jax.block_until_ready(jax.jit(positional_encoding)(x3, pe3))
    assert jnp.allclose(out3, ref3, atol=1e-6), "mismatch vs reference (fallback path)"

    print("KERNEL_OK")
</pallas_src>

<mosaic_0001>
module attributes {stable_mosaic.version = 11 : i64} {
  func.func @_pe_add_kernel(%arg0: i32, %arg1: i32, %arg2: memref<8x128xf32, #tpu.memory_space<vmem>>, %arg3: memref<8x64xf32, #tpu.memory_space<vmem>>, %arg4: memref<8x128xf32, #tpu.memory_space<vmem>>) attributes {dimension_semantics = [#tpu.dimension_semantics<parallel>, #tpu.dimension_semantics<parallel>], iteration_bounds = array<i64: 1, 1>, scalar_prefetch = 0 : i64, scratch_operands = 0 : i64, tpu.core_type = #tpu.core_type<tc>, window_params = [{transform_indices = @transform_0, window_bounds = array<i64: 8, 128>}, {transform_indices = @transform_1, window_bounds = array<i64: 8, 64>}, {transform_indices = @transform_2, window_bounds = array<i64: 8, 128>}]} {
    %c0 = arith.constant 0 : index
    %c0_0 = arith.constant 0 : index
    %0 = vector.load %arg3[%c0, %c0_0] : memref<8x64xf32, #tpu.memory_space<vmem>>, vector<8x64xf32>
    %c0_1 = arith.constant 0 : index
    %c0_2 = arith.constant 0 : index
    %1 = vector.load %arg2[%c0_1, %c0_2] : memref<8x128xf32, #tpu.memory_space<vmem>>, vector<8x64xf32>
    %2 = arith.addf %1, %0 : vector<8x64xf32>
    %c0_3 = arith.constant 0 : index
    %c0_4 = arith.constant 0 : index
    %3 = vector.load %arg4[%c0_3, %c0_4] : memref<8x128xf32, #tpu.memory_space<vmem>>, vector<8x64xf32>
    tpu.vector_store %arg4[%c0_3, %c0_4], %2 {strides = array<i32>} : memref<8x128xf32, #tpu.memory_space<vmem>>, vector<8x64xf32>,
    %c0_5 = arith.constant 0 : index
    %c64 = arith.constant 64 : index
    %4 = vector.load %arg2[%c0_5, %c64] : memref<8x128xf32, #tpu.memory_space<vmem>>, vector<8x64xf32>
    %5 = arith.addf %4, %0 : vector<8x64xf32>
    %c0_6 = arith.constant 0 : index
    %c64_7 = arith.constant 64 : index
    %6 = vector.load %arg4[%c0_6, %c64_7] : memref<8x128xf32, #tpu.memory_space<vmem>>, vector<8x64xf32>
    tpu.vector_store %arg4[%c0_6, %c64_7], %5 {strides = array<i32>} : memref<8x128xf32, #tpu.memory_space<vmem>>, vector<8x64xf32>,
    return
  }
  func.func @transform_0(%arg0: i32, %arg1: i32) -> (i32, i32) {
    %c0_i32 = arith.constant 0 : i32
    return %arg0, %arg1 : i32, i32
  }
  func.func @transform_1(%arg0: i32, %arg1: i32) -> (i32, i32) {
    %c0_i32 = arith.constant 0 : i32
    %c0_i32_0 = arith.constant 0 : i32
    return %arg0, %c0_i32 : i32, i32
  }
  func.func @transform_2(%arg0: i32, %arg1: i32) -> (i32, i32) {
    %c0_i32 = arith.constant 0 : i32
    return %arg0, %arg1 : i32, i32
  }
}

</mosaic_0001>

<bundles_post_ra>
// kernel: positional_encoding.1
= control target key start
LH: loop header
LB: loop body
LE: loop exit
PB: predicated region body
PF: predicated region fallthrough
CT: control target
= control target key end

     0   :  { %vm14_vm0 = vcmask 523264   ;;  %s29_s13 = smov 64   ;;  %vm22_vm1 = vcmask 1048064   ;;  %s60_s0 = inlined_call_operand.vmem [shape: f32[8,128], index: 0, kind: input, shape index: {}, may-alias: {0,2}]   ;;  %s61_s1 = inlined_call_operand.vmem [shape: f32[5000,64], index: 1, kind: input, shape index: {}]   ;;  %s62_s2 = inlined_call_operand.vmem [shape: f32[8,128], index: 2, kind: output, shape index: {}, may-alias: {0,2}]  }
   0x1   :  { %v11_v0 = vld [vmem:[%s61_s1] sm:$0xff] }
   0x2   :  { %v12_v1 = vld [vmem:[%s60_s0] sm:$0xff]  ;;  %18 = vrot.lane.b32.xlu0 %v11_v0, %s29_s13 }
   0x3   :  { %v13_v2 = vadd.f32 %v12_v1, %v11_v0 }
   0x5   :  { %15 = vst.msk [vmem:[%s62_s2] sm:$0xff] %vm14_vm0, %v13_v2 }
   0xc   :  { %v16_v3 = vld [vmem:[%s60_s0] sm:$0xff] }
  0x74   :  { %v19_v4 = vpop.permute.xlu0 %18 }
  0x75   :  { %v21_v5 = vadd.f32 %v19_v4, %v16_v3 }
  0x77   :  { %23 = vst.msk [vmem:[%s62_s2] sm:$0xff] %vm22_vm1, %v21_v5 }

</bundles_post_ra>
